<compile_context>
chip_gen: v7x
topology: tpu7x:2x2x1
jax: 0.10.0
libtpu: 0.0.40
codegen_flags: <defaults>
</compile_context>

<pallas_src>
import functools

import jax
import jax.numpy as jnp
from jax import lax
from jax.experimental import pallas as pl
from jax.experimental.pallas import tpu as pltpu


LANES = 128      # TPU lane width  (last-dim tiling unit)
SUBLANES = 8     # f32 sublane unit; bf16 packs 16


def _round_up(x, m):
    return ((x + m - 1) // m) * m


def _vmem_capacity_bytes():
    try:
        return int(pltpu.get_tpu_info().vmem_capacity_bytes)
    except Exception:
        return 64 * 1024 * 1024   # conservative fallback (v7x per-core size)


# ------------------------------ fused kernel -------------------------------


def _fused_block_gnn_kernel(
    xw0_ref,   # [N_pad, D]          bf16  X @ W0 (precomputed outside, resident)
    adj_ref,   # [N_pad, N_pad] bf16 (resident)  OR  [TM, N_pad] bf16 (streamed)
    wn_ref,    # [1, D, D]           bf16  W_{l+1} (zero dummy at the last layer)
    b_ref,     # [1, 1, D]           f32   b_l
    pt_ref,    # [TM, G_pad]         f32   pool-matrix columns (transposed), tile i
    lw_ref,    # [D, C_pad]          f32   final linear weight (resident)
    lb_ref,    # [1, C_pad]          f32   final linear bias   (resident)
    y_ref,     # [G_pad, C_pad]      f32   output logits       (resident)
    gm_ref,    # [G_pad, D]          f32   output global mean  (resident accumulator)
    xw_ref,    # [2*N_pad, D]        bf16  ping-pong (H_{l-1} @ W_l) buffers (scratch)
    *,
    tile_m,
    n_pad,
    adj_resident,
):
    l = pl.program_id(0)                 # layer index   (outer, sequential)
    i = pl.program_id(1)                 # adj row tile  (inner)
    last_l = pl.num_programs(0) - 1
    last_i = pl.num_programs(1) - 1

    # Seed the ping-pong buffer once: layer 0 consumes half #1 = X @ W0
    # (computed by a tiny XLA matmul outside the kernel).
    @pl.when((l == 0) & (i == 0))
    def _():
        xw_ref[pl.ds(n_pad, n_pad), :] = xw0_ref[...]

    row0 = pl.multiple_of(i * tile_m, tile_m)
    if adj_resident:
        adj_tile = adj_ref[pl.ds(row0, tile_m), :]       # slice resident Ahat
    else:
        adj_tile = adj_ref[...]                          # streamed row tile

    # Layer l consumes half (l+1)%2 and produces half l%2 of xw_ref.
    cur_off = pl.multiple_of(((l + 1) % 2) * n_pad, tile_m)
    nxt_off = pl.multiple_of((l % 2) * n_pad + i * tile_m, tile_m)

    # h_l[tile] = Ahat[tile] @ (H_{l-1} W_l) + b_l  (bf16 operands, f32 accum).
    out = jnp.dot(adj_tile, xw_ref[pl.ds(cur_off, n_pad), :],
                  preferred_element_type=jnp.float32)
    out = out + b_ref[0]
    # ReLU on hidden layers only (layer 0 has none): scalar-selected clip
    # constant instead of a full-tile select.
    clip = jnp.where(l > 0, 0.0, -jnp.inf)
    act = jnp.maximum(out, clip)                         # [TM, D] f32 = h_l rows
    # Note: padded node rows (zero adjacency rows) hold relu-ish(bias) junk;
    # they never contaminate real rows because the padded adjacency columns
    # and padded pool-matrix rows are zero.

    # Fold the NEXT layer's H @ W into the producing tile (no layer-boundary
    # hoist bubble; stays under the adjacency DMA shadow).  At the last layer
    # wn is a zero dummy and the produced half is never read; the kernel is
    # DMA-bound so this spare MXU work is free.
    xw_next = jnp.dot(act.astype(jnp.bfloat16), wn_ref[0],
                      preferred_element_type=jnp.float32)
    xw_ref[pl.ds(nxt_off, tile_m), :] = xw_next.astype(xw_ref.dtype)

    # Last layer: accumulate the global mean pool incrementally from this tile
    # (pool matrix streamed transposed -> no [G,N] residency, no serial tail).
    @pl.when((l == last_l) & (i == 0))
    def _():
        gm_ref[...] = jnp.zeros_like(gm_ref)

    @pl.when(l == last_l)
    def _():
        gm_ref[...] += lax.dot_general(
            pt_ref[...], act, (((0,), (0,)), ((), ())),
            preferred_element_type=jnp.float32)

    # Final tiny Linear from the accumulated global mean.
    @pl.when((l == last_l) & (i == last_i))
    def _():
        gm = gm_ref[...]
        y = jnp.dot(gm, lw_ref[...], preferred_element_type=jnp.float32) + lb_ref[...]
        y_ref[...] = y.astype(y_ref.dtype)


# ------------------------------- wrapper ------------------------------------


def block_gnn_forward(params, x, adj, pool_mat, *, tile_m=None, force_adj_stream=False):
    """Fused BlockGNN forward (eval mode).  Returns (logits, global_mean).

    adj:      dense normalized adjacency [N, N] (f32).
    pool_mat: dense mean-pool matrix     [G, N] (f32).
    """
    n, _ = x.shape
    h_dim = params["w0"].shape[1]
    c_dim = params["lin_w"].shape[1]
    g = pool_mat.shape[0]
    num_layers = 1 + len(params["hidden"])

    vmem_cap = _vmem_capacity_bytes()
    # Per-generation defaults: big tiles on 128 MiB parts (v5e/v6e), smaller on
    # 64 MiB parts (v7x).
    if tile_m is None:
        tile_m = 512 if vmem_cap >= 96 * 1024 * 1024 else 256

    d = _round_up(h_dim, LANES)          # padded feature width (only H matters:
    c_pad = _round_up(c_dim, LANES)      # x enters via XW0 computed outside)
    g_pad = _round_up(g, SUBLANES)
    tile_m = max(16, _round_up(min(tile_m, _round_up(n, 16)), 16))

    budget = int(0.70 * vmem_cap)        # leave headroom for compiler buffers

    def vmem_estimate(n_pad_, tile_m_, adj_res):
        est = 2 * n_pad_ * d * 2              # xw ping-pong scratch (bf16)
        est += 2 * n_pad_ * d * 2             # resident xw0 input (conservative x2)
        est += 2 * d * d * 2 + 2 * d * 4      # W_next / bias blocks
        est += 2 * tile_m_ * g_pad * 4        # streamed pool^T tiles
        est += d * c_pad * 4 + c_pad * 4      # final linear params
        est += g_pad * c_pad * 4 + g_pad * d * 4   # resident outputs
        if adj_res:
            est += n_pad_ * n_pad_ * 2        # resident Ahat (bf16, DMA'd once)
        else:
            est += 3 * tile_m_ * n_pad_ * 2   # Buffered(3) Ahat row tiles
        return est

    # Shrink the row tile if even the streamed configuration would not fit.
    while True:
        n_pad = _round_up(n, tile_m)
        if tile_m <= 16 or vmem_estimate(n_pad, tile_m, False) <= budget:
            break
        tile_m = max(16, _round_up(tile_m // 2, 16))
    n_pad = _round_up(n, tile_m)
    n_tiles = n_pad // tile_m

    # Ahat residency: DMA the adjacency once (instead of once per layer)
    # whenever it fits the per-generation VMEM budget.
    adj_resident = (not force_adj_stream) and (
        vmem_estimate(n_pad, tile_m, True) <= budget)

    def pad2(a, rows, cols):
        return jnp.pad(a, ((0, rows - a.shape[0]), (0, cols - a.shape[1])))

    f32 = jnp.float32
    # Layer-0 X @ W0 as a tiny XLA matmul outside the kernel.
    xw0 = pad2(x.astype(f32) @ params["w0"].astype(f32), n_pad, d).astype(jnp.bfloat16)
    adj_p = pad2(adj.astype(f32), n_pad, n_pad).astype(jnp.bfloat16)
    pt = pad2(pool_mat.astype(f32).T, n_pad, g_pad)                # P^T, streamed

    # Stack of "next layer" weights (bf16) and per-layer biases (f32).
    wn = [pad2(wi.astype(f32), d, d) for wi, _ in params["hidden"]]
    wn.append(jnp.zeros((d, d), f32))                  # dummy for the last layer
    wn_stack = jnp.stack(wn).astype(jnp.bfloat16)      # [L, D, D]
    bs = [jnp.pad(params["b0"].astype(f32), (0, d - h_dim))]
    bs += [jnp.pad(bi.astype(f32), (0, d - h_dim)) for _, bi in params["hidden"]]
    b_stack = jnp.stack(bs)[:, None, :]                # [L, 1, D]

    lw = pad2(params["lin_w"].astype(f32), d, c_pad)
    lb = jnp.pad(params["lin_b"].astype(f32), (0, c_pad - c_dim))[None, :]

    if adj_resident:
        adj_spec = pl.BlockSpec((n_pad, n_pad), lambda l, i: (0, 0))
    else:
        adj_spec = pl.BlockSpec((tile_m, n_pad), lambda l, i: (i, 0),
                                pipeline_mode=pl.Buffered(3))

    kernel = functools.partial(_fused_block_gnn_kernel, tile_m=tile_m,
                               n_pad=n_pad, adj_resident=adj_resident)

    y_pad, gm_pad = pl.pallas_call(
        kernel,
        out_shape=(
            jax.ShapeDtypeStruct((g_pad, c_pad), jnp.float32),
            jax.ShapeDtypeStruct((g_pad, d), jnp.float32),
        ),
        grid_spec=pltpu.PrefetchScalarGridSpec(
            num_scalar_prefetch=0,
            grid=(num_layers, n_tiles),
            in_specs=[
                pl.BlockSpec((n_pad, d), lambda l, i: (0, 0)),       # X @ W0
                adj_spec,                                            # Ahat
                pl.BlockSpec((1, d, d), lambda l, i: (l, 0, 0)),     # W_{l+1}
                pl.BlockSpec((1, 1, d), lambda l, i: (l, 0, 0)),     # b_l
                pl.BlockSpec((tile_m, g_pad), lambda l, i: (i, 0)),  # P^T tile
                pl.BlockSpec((d, c_pad), lambda l, i: (0, 0)),       # lin_w
                pl.BlockSpec((1, c_pad), lambda l, i: (0, 0)),       # lin_b
            ],
            out_specs=(
                pl.BlockSpec((g_pad, c_pad), lambda l, i: (0, 0)),   # logits
                pl.BlockSpec((g_pad, d), lambda l, i: (0, 0)),       # global mean
            ),
            scratch_shapes=[
                pltpu.VMEM((2 * n_pad, d), jnp.bfloat16),            # xw ping-pong
            ],
        ),
        compiler_params=pltpu.CompilerParams(
            # Layer l reads the xw half produced during layer l-1 and the last
            # layer accumulates into gm, so neither axis may be megacore-
            # "parallel" in this single-scratch formulation.
            # TODO(synk): v7x dual-TensorCore split of the row-tile axis
            # (per-core xw replica + boundary exchange) is a further ~2x.
            dimension_semantics=("arbitrary", "arbitrary"),
            vmem_limit_bytes=max(32 * 1024 * 1024, int(0.85 * vmem_cap)),
        ),
    )(xw0, adj_p, wn_stack, b_stack, pt, lw, lb)

    return y_pad[:g, :c_dim], gm_pad[:g, :h_dim]


# --------------------------- preprocessing (JAX) ----------------------------


def normalized_adjacency(edge_index, num_nodes):
    """Dense Ahat = D^-1/2 (A + I) D^-1/2 (PyG GCNConv default normalization).

    Multi-edges are summed (add aggregation), matching GCNConv.
    """
    src, dst = edge_index
    a = jnp.zeros((num_nodes, num_nodes), jnp.float32)
    a = a.at[dst, src].add(1.0)
    a = a + jnp.eye(num_nodes, dtype=jnp.float32)           # self loops
    deg = a.sum(axis=1)
    dinv = jnp.where(deg > 0, 1.0 / jnp.sqrt(deg), 0.0)
    return dinv[:, None] * a * dinv[None, :]


def mean_pool_matrix(batch, num_graphs):
    """Dense [G, N] matrix with 1/count_g at (g, i) for node i in graph g."""
    onehot = (batch[None, :] == jnp.arange(num_graphs)[:, None]).astype(jnp.float32)
    counts = onehot.sum(axis=1, keepdims=True)
    return onehot / jnp.maximum(counts, 1.0)


# --------------------------------- main --------------------------------------


if __name__ == "__main__":
    num_nodes = 48
    num_node_features = 8
    hidden_channels = 32
    num_classes = 4
    hidden_layer = 2
    num_graphs = 2
    nodes_per_graph = num_nodes // num_graphs

    key = jax.random.PRNGKey(0)
    keys = jax.random.split(key, 10)

    x = jax.random.normal(keys[0], (num_nodes, num_node_features), jnp.float32)

    # Two ring graphs (undirected -> both directions listed).
    def ring_edges(offset, n):
        s = jnp.arange(n) + offset
        d = (jnp.arange(n) + 1) % n + offset
        return jnp.stack([jnp.concatenate([s, d]), jnp.concatenate([d, s])])

    edge_index = jnp.concatenate(
        [ring_edges(gi * nodes_per_graph, nodes_per_graph) for gi in range(num_graphs)],
        axis=1,
    )
    batch = jnp.concatenate(
        [jnp.full((nodes_per_graph,), gi, jnp.int32) for gi in range(num_graphs)]
    )

    def glorot(k, shape):
        fan_in, fan_out = shape
        lim = jnp.sqrt(6.0 / (fan_in + fan_out))
        return jax.random.uniform(k, shape, jnp.float32, -lim, lim)

    params = {
        "w0": glorot(keys[1], (num_node_features, hidden_channels)),
        "b0": 0.01 * jax.random.normal(keys[2], (hidden_channels,), jnp.float32),
        "hidden": [
            (
                glorot(keys[3 + i], (hidden_channels, hidden_channels)),
                0.01 * jax.random.normal(keys[5 + i], (hidden_channels,), jnp.float32),
            )
            for i in range(hidden_layer)
        ],
        "lin_w": glorot(keys[7], (hidden_channels, num_classes)),
        "lin_b": 0.01 * jax.random.normal(keys[8], (num_classes,), jnp.float32),
    }

    adj = normalized_adjacency(edge_index, num_nodes)
    pool_mat = mean_pool_matrix(batch, num_graphs)

    # Pure-JAX f32 reference of the same math (kernel uses bf16 adjacency /
    # weights / activations on the MXU with f32 accumulation, hence tolerance).
    def ref_forward():
        h = adj @ (x @ params["w0"]) + params["b0"]
        for wi, bi in params["hidden"]:
            h = jnp.maximum(adj @ (h @ wi) + bi, 0.0)
        gm = pool_mat @ h
        return gm @ params["lin_w"] + params["lin_b"], gm

    y_exp, gm_exp = ref_forward()

    # tile_m=16 -> 3 adjacency row tiles per layer: exercises the ping-pong
    # fold, incremental pooling and the epilogue.  Run both adjacency paths
    # (VMEM-resident and HBM-streamed with Buffered(3)) against the reference.
    for force_stream in (False, True):
        fwd = jax.jit(functools.partial(block_gnn_forward, tile_m=16,
                                        force_adj_stream=force_stream))
        y, global_mean = fwd(params, x, adj, pool_mat)
        y = jax.block_until_ready(y)
        global_mean = jax.block_until_ready(global_mean)

        assert y.shape == (num_graphs, num_classes)
        assert global_mean.shape == (num_graphs, hidden_channels)
        assert jnp.allclose(y, y_exp, atol=5e-2, rtol=5e-2)
        assert jnp.allclose(global_mean, gm_exp, atol=5e-2, rtol=5e-2)

    print("KERNEL_OK")
</pallas_src>

<mosaic_0001>
module attributes {stable_mosaic.version = 11 : i64} {
  func.func @_fused_block_gnn_kernel(%arg0: i32, %arg1: i32, %arg2: memref<48x128xbf16, #tpu.memory_space<vmem>>, %arg3: memref<48x48xbf16, #tpu.memory_space<vmem>>, %arg4: memref<1x128x128xbf16, #tpu.memory_space<vmem>>, %arg5: memref<1x1x128xf32, #tpu.memory_space<vmem>>, %arg6: memref<16x8xf32, #tpu.memory_space<vmem>>, %arg7: memref<128x128xf32, #tpu.memory_space<vmem>>, %arg8: memref<1x128xf32, #tpu.memory_space<vmem>>, %arg9: memref<8x128xf32, #tpu.memory_space<vmem>>, %arg10: memref<8x128xf32, #tpu.memory_space<vmem>>, %arg11: memref<96x128xbf16, #tpu.memory_space<vmem>>) attributes {dimension_semantics = [#tpu.dimension_semantics<arbitrary>, #tpu.dimension_semantics<arbitrary>], iteration_bounds = array<i64: 3, 3>, scalar_prefetch = 0 : i64, scratch_operands = 1 : i64, tpu.core_type = #tpu.core_type<tc>, window_params = [{pipeline_mode = #tpu.pipeline_mode<synchronous>, transform_indices = @transform_0, window_bounds = array<i64: 48, 128>}, {pipeline_mode = #tpu.pipeline_mode<synchronous>, transform_indices = @transform_1, window_bounds = array<i64: 48, 48>}, {transform_indices = @transform_2, window_bounds = array<i64: 1, 128, 128>}, {transform_indices = @transform_3, window_bounds = array<i64: 1, 1, 128>}, {transform_indices = @transform_4, window_bounds = array<i64: 16, 8>}, {pipeline_mode = #tpu.pipeline_mode<synchronous>, transform_indices = @transform_5, window_bounds = array<i64: 128, 128>}, {pipeline_mode = #tpu.pipeline_mode<synchronous>, transform_indices = @transform_6, window_bounds = array<i64: 1, 128>}, {pipeline_mode = #tpu.pipeline_mode<synchronous>, transform_indices = @transform_7, window_bounds = array<i64: 8, 128>}, {pipeline_mode = #tpu.pipeline_mode<synchronous>, transform_indices = @transform_8, window_bounds = array<i64: 8, 128>}]} {
    %c0_i32 = arith.constant 0 : i32
    %0 = arith.cmpi eq, %arg0, %c0_i32 : i32
    %c0_i32_0 = arith.constant 0 : i32
    %1 = arith.cmpi eq, %arg1, %c0_i32_0 : i32
    %2 = arith.andi %0, %1 : i1
    %3 = arith.extui %2 : i1 to i32
    %c0_i32_1 = arith.constant 0 : i32
    %4 = arith.cmpi ne, %3, %c0_i32_1 : i32
    scf.if %4 {
      %c0_35 = arith.constant 0 : index
      %c0_36 = arith.constant 0 : index
      %67 = vector.load %arg2[%c0_35, %c0_36] : memref<48x128xbf16, #tpu.memory_space<vmem>>, vector<48x128xbf16>
      %c48 = arith.constant 48 : index
      %c0_37 = arith.constant 0 : index
      %68 = vector.load %arg11[%c48, %c0_37] : memref<96x128xbf16, #tpu.memory_space<vmem>>, vector<48x128xbf16>
      tpu.vector_store %arg11[%c48, %c0_37], %67 {strides = array<i32>} : memref<96x128xbf16, #tpu.memory_space<vmem>>, vector<48x128xbf16>,
    } else {
    }
    %c16_i32 = arith.constant 16 : i32
    %5 = arith.muli %arg1, %c16_i32 : i32
    %6 = tpu.assume_multiple %5, 16 : i32
    %7 = arith.index_cast %6 : i32 to index
    %c0 = arith.constant 0 : index
    %8 = vector.load %arg3[%7, %c0] : memref<48x48xbf16, #tpu.memory_space<vmem>>, vector<16x48xbf16>
    %c1_i32 = arith.constant 1 : i32
    %9 = arith.addi %arg0, %c1_i32 : i32
    %c2_i32 = arith.constant 2 : i32
    %c0_i32_2 = arith.constant 0 : i32
    %10 = arith.cmpi eq, %c2_i32, %c0_i32_2 : i32
    %c1_i32_3 = arith.constant 1 : i32
    %11 = arith.select %10, %c1_i32_3, %c2_i32 : i32
    %12 = arith.remsi %9, %11 : i32
    %c0_i32_4 = arith.constant 0 : i32
    %13 = arith.cmpi ne, %12, %c0_i32_4 : i32
    %c0_i32_5 = arith.constant 0 : i32
    %14 = arith.cmpi slt, %12, %c0_i32_5 : i32
    %c0_i32_6 = arith.constant 0 : i32
    %15 = arith.cmpi slt, %11, %c0_i32_6 : i32
    %16 = arith.xori %14, %15 : i1
    %17 = arith.andi %16, %13 : i1
    %18 = arith.addi %12, %11 : i32
    %19 = arith.select %17, %18, %12 : i32
    %c48_i32 = arith.constant 48 : i32
    %20 = arith.muli %19, %c48_i32 : i32
    %21 = tpu.assume_multiple %20, 16 : i32
    %c2_i32_7 = arith.constant 2 : i32
    %c0_i32_8 = arith.constant 0 : i32
    %22 = arith.cmpi eq, %c2_i32_7, %c0_i32_8 : i32
    %c1_i32_9 = arith.constant 1 : i32
    %23 = arith.select %22, %c1_i32_9, %c2_i32_7 : i32
    %24 = arith.remsi %arg0, %23 : i32
    %c0_i32_10 = arith.constant 0 : i32
    %25 = arith.cmpi ne, %24, %c0_i32_10 : i32
    %c0_i32_11 = arith.constant 0 : i32
    %26 = arith.cmpi slt, %24, %c0_i32_11 : i32
    %c0_i32_12 = arith.constant 0 : i32
    %27 = arith.cmpi slt, %23, %c0_i32_12 : i32
    %28 = arith.xori %26, %27 : i1
    %29 = arith.andi %28, %25 : i1
    %30 = arith.addi %24, %23 : i32
    %31 = arith.select %29, %30, %24 : i32
    %c48_i32_13 = arith.constant 48 : i32
    %32 = arith.muli %31, %c48_i32_13 : i32
    %c16_i32_14 = arith.constant 16 : i32
    %33 = arith.muli %arg1, %c16_i32_14 : i32
    %34 = arith.addi %32, %33 : i32
    %35 = tpu.assume_multiple %34, 16 : i32
    %36 = arith.index_cast %21 : i32 to index
    %c0_15 = arith.constant 0 : index
    %37 = vector.load %arg11[%36, %c0_15] : memref<96x128xbf16, #tpu.memory_space<vmem>>, vector<48x128xbf16>
    %cst = arith.constant dense<0.000000e+00> : vector<16x128xf32>
    %38 = tpu.matmul %8, %37, %cst {dimension_numbers = #tpu.dot_dimension_numbers<[1], [0], [0], [1], [0, 0, 1, 1], [], []>} : vector<16x48xbf16>, vector<48x128xbf16>, vector<16x128xf32> -> vector<16x128xf32>
    %c0_16 = arith.constant 0 : index
    %c0_17 = arith.constant 0 : index
    %c0_18 = arith.constant 0 : index
    %39 = vector.load %arg5[%c0_16, %c0_17, %c0_18] : memref<1x1x128xf32, #tpu.memory_space<vmem>>, vector<1x1x128xf32>
    %40 = vector.shape_cast %39 : vector<1x1x128xf32> to vector<1x128xf32>
    %41 = vector.broadcast %40 : vector<1x128xf32> to vector<16x128xf32>
    %42 = arith.addf %38, %41 : vector<16x128xf32>
    %c0_i32_19 = arith.constant 0 : i32
    %43 = arith.cmpi sgt, %arg0, %c0_i32_19 : i32
    %cst_20 = arith.constant 0.000000e+00 : f32
    %cst_21 = arith.constant 0xFF800000 : f32
    %44 = arith.select %43, %cst_20, %cst_21 : f32
    %45 = vector.broadcast %44 : f32 to vector<16x128xf32>
    %46 = arith.maximumf %42, %45 : vector<16x128xf32>
    %47 = arith.truncf %46 : vector<16x128xf32> to vector<16x128xbf16>
    %c0_22 = arith.constant 0 : index
    %c0_23 = arith.constant 0 : index
    %c0_24 = arith.constant 0 : index
    %48 = vector.load %arg4[%c0_22, %c0_23, %c0_24] : memref<1x128x128xbf16, #tpu.memory_space<vmem>>, vector<1x128x128xbf16>
    %49 = vector.shape_cast %48 : vector<1x128x128xbf16> to vector<128x128xbf16>
    %cst_25 = arith.constant dense<0.000000e+00> : vector<16x128xf32>
    %50 = tpu.matmul %47, %49, %cst_25 {dimension_numbers = #tpu.dot_dimension_numbers<[1], [0], [0], [1], [0, 0, 1, 1], [], []>} : vector<16x128xbf16>, vector<128x128xbf16>, vector<16x128xf32> -> vector<16x128xf32>
    %51 = arith.truncf %50 : vector<16x128xf32> to vector<16x128xbf16>
    %52 = arith.index_cast %35 : i32 to index
    %c0_26 = arith.constant 0 : index
    %53 = vector.load %arg11[%52, %c0_26] : memref<96x128xbf16, #tpu.memory_space<vmem>>, vector<16x128xbf16>
    tpu.vector_store %arg11[%52, %c0_26], %51 {strides = array<i32>} : memref<96x128xbf16, #tpu.memory_space<vmem>>, vector<16x128xbf16>,
    %c2_i32_27 = arith.constant 2 : i32
    %54 = arith.cmpi eq, %arg0, %c2_i32_27 : i32
    %c0_i32_28 = arith.constant 0 : i32
    %55 = arith.cmpi eq, %arg1, %c0_i32_28 : i32
    %56 = arith.andi %54, %55 : i1
    %57 = arith.extui %56 : i1 to i32
    %c0_i32_29 = arith.constant 0 : i32
    %58 = arith.cmpi ne, %57, %c0_i32_29 : i32
    scf.if %58 {
      %cst_35 = arith.constant 0.000000e+00 : f32
      %67 = vector.broadcast %cst_35 : f32 to vector<8x128xf32>
      %c0_36 = arith.constant 0 : index
      %c0_37 = arith.constant 0 : index
      %68 = vector.load %arg10[%c0_36, %c0_37] : memref<8x128xf32, #tpu.memory_space<vmem>>, vector<8x128xf32>
      tpu.vector_store %arg10[%c0_36, %c0_37], %67 {strides = array<i32>} : memref<8x128xf32, #tpu.memory_space<vmem>>, vector<8x128xf32>,
    } else {
    }
    %c2_i32_30 = arith.constant 2 : i32
    %59 = arith.cmpi eq, %arg0, %c2_i32_30 : i32
    %60 = arith.extui %59 : i1 to i32
    %c0_i32_31 = arith.constant 0 : i32
    %61 = arith.cmpi ne, %60, %c0_i32_31 : i32
    scf.if %61 {
      %c0_35 = arith.constant 0 : index
      %c0_36 = arith.constant 0 : index
      %67 = vector.load %arg10[%c0_35, %c0_36] : memref<8x128xf32, #tpu.memory_space<vmem>>, vector<8x128xf32>
      %c0_37 = arith.constant 0 : index
      %c0_38 = arith.constant 0 : index
      %68 = vector.load %arg6[%c0_37, %c0_38] : memref<16x8xf32, #tpu.memory_space<vmem>>, vector<16x8xf32>
      %cst_39 = arith.constant dense<0.000000e+00> : vector<8x128xf32>
      %69 = tpu.matmul %68, %46, %cst_39 {dimension_numbers = #tpu.dot_dimension_numbers<[0], [0], [1], [1], [0, 1, 1, 1], [], []>} : vector<16x8xf32>, vector<16x128xf32>, vector<8x128xf32> -> vector<8x128xf32>
      %70 = arith.addf %67, %69 : vector<8x128xf32>
      %c0_40 = arith.constant 0 : index
      %c0_41 = arith.constant 0 : index
      %71 = vector.load %arg10[%c0_40, %c0_41] : memref<8x128xf32, #tpu.memory_space<vmem>>, vector<8x128xf32>
      tpu.vector_store %arg10[%c0_40, %c0_41], %70 {strides = array<i32>} : memref<8x128xf32, #tpu.memory_space<vmem>>, vector<8x128xf32>,
    } else {
    }
    %c2_i32_32 = arith.constant 2 : i32
    %62 = arith.cmpi eq, %arg0, %c2_i32_32 : i32
    %c2_i32_33 = arith.constant 2 : i32
    %63 = arith.cmpi eq, %arg1, %c2_i32_33 : i32
    %64 = arith.andi %62, %63 : i1
    %65 = arith.extui %64 : i1 to i32
    %c0_i32_34 = arith.constant 0 : i32
    %66 = arith.cmpi ne, %65, %c0_i32_34 : i32
    scf.if %66 {
      %c0_35 = arith.constant 0 : index
      %c0_36 = arith.constant 0 : index
      %67 = vector.load %arg10[%c0_35, %c0_36] : memref<8x128xf32, #tpu.memory_space<vmem>>, vector<8x128xf32>
      %c0_37 = arith.constant 0 : index
      %c0_38 = arith.constant 0 : index
      %68 = vector.load %arg7[%c0_37, %c0_38] : memref<128x128xf32, #tpu.memory_space<vmem>>, vector<128x128xf32>
      %cst_39 = arith.constant dense<0.000000e+00> : vector<8x128xf32>
      %69 = tpu.matmul %67, %68, %cst_39 {dimension_numbers = #tpu.dot_dimension_numbers<[1], [0], [0], [1], [0, 0, 1, 1], [], []>} : vector<8x128xf32>, vector<128x128xf32>, vector<8x128xf32> -> vector<8x128xf32>
      %c0_40 = arith.constant 0 : index
      %c0_41 = arith.constant 0 : index
      %70 = vector.load %arg8[%c0_40, %c0_41] : memref<1x128xf32, #tpu.memory_space<vmem>>, vector<1x128xf32>
      %71 = vector.broadcast %70 : vector<1x128xf32> to vector<8x128xf32>
      %72 = arith.addf %69, %71 : vector<8x128xf32>
      %c0_42 = arith.constant 0 : index
      %c0_43 = arith.constant 0 : index
      %73 = vector.load %arg9[%c0_42, %c0_43] : memref<8x128xf32, #tpu.memory_space<vmem>>, vector<8x128xf32>
      tpu.vector_store %arg9[%c0_42, %c0_43], %72 {strides = array<i32>} : memref<8x128xf32, #tpu.memory_space<vmem>>, vector<8x128xf32>,
    } else {
    }
    return
  }
  func.func @transform_0(%arg0: i32, %arg1: i32) -> (i32, i32) {
    %c0_i32 = arith.constant 0 : i32
    %c0_i32_0 = arith.constant 0 : i32
    %c0_i32_1 = arith.constant 0 : i32
    return %c0_i32, %c0_i32_0 : i32, i32
  }
  func.func @transform_1(%arg0: i32, %arg1: i32) -> (i32, i32) {
    %c0_i32 = arith.constant 0 : i32
    %c0_i32_0 = arith.constant 0 : i32
    %c0_i32_1 = arith.constant 0 : i32
    return %c0_i32, %c0_i32_0 : i32, i32
  }
  func.func @transform_2(%arg0: i32, %arg1: i32) -> (i32, i32, i32) {
    %c0_i32 = arith.constant 0 : i32
    %c0_i32_0 = arith.constant 0 : i32
    %c0_i32_1 = arith.constant 0 : i32
    return %arg0, %c0_i32, %c0_i32_0 : i32, i32, i32
  }
  func.func @transform_3(%arg0: i32, %arg1: i32) -> (i32, i32, i32) {
    %c0_i32 = arith.constant 0 : i32
    %c0_i32_0 = arith.constant 0 : i32
    %c0_i32_1 = arith.constant 0 : i32
    return %arg0, %c0_i32, %c0_i32_0 : i32, i32, i32
  }
  func.func @transform_4(%arg0: i32, %arg1: i32) -> (i32, i32) {
    %c0_i32 = arith.constant 0 : i32
    %c0_i32_0 = arith.constant 0 : i32
    return %arg1, %c0_i32 : i32, i32
  }
  func.func @transform_5(%arg0: i32, %arg1: i32) -> (i32, i32) {
    %c0_i32 = arith.constant 0 : i32
    %c0_i32_0 = arith.constant 0 : i32
    %c0_i32_1 = arith.constant 0 : i32
    return %c0_i32, %c0_i32_0 : i32, i32
  }
  func.func @transform_6(%arg0: i32, %arg1: i32) -> (i32, i32) {
    %c0_i32 = arith.constant 0 : i32
    %c0_i32_0 = arith.constant 0 : i32
    %c0_i32_1 = arith.constant 0 : i32
    return %c0_i32, %c0_i32_0 : i32, i32
  }
  func.func @transform_7(%arg0: i32, %arg1: i32) -> (i32, i32) {
    %c0_i32 = arith.constant 0 : i32
    %c0_i32_0 = arith.constant 0 : i32
    %c0_i32_1 = arith.constant 0 : i32
    return %c0_i32, %c0_i32_0 : i32, i32
  }
  func.func @transform_8(%arg0: i32, %arg1: i32) -> (i32, i32) {
    %c0_i32 = arith.constant 0 : i32
    %c0_i32_0 = arith.constant 0 : i32
    %c0_i32_1 = arith.constant 0 : i32
    return %c0_i32, %c0_i32_0 : i32, i32
  }
}

</mosaic_0001>

<bundles_post_ra>
// kernel: block_gnn_forward.1
= control target key start
LH: loop header
LB: loop body
LE: loop exit
PB: predicated region body
PF: predicated region fallthrough
CT: control target
= control target key end

     0   :  { %s1204_s27 = smov 0   ;;  %s1206_s28 = smov 0   ;;  %s1396_s0 = inlined_call_operand.vmem [shape: bf16[48,128], index: 0, kind: input, shape index: {}]   ;;  %s1397_s1 = inlined_call_operand.vmem [shape: bf16[48,48], index: 1, kind: input, shape index: {}]   ;;  %s1398_s2 = inlined_call_operand.vmem [shape: bf16[3,128,128], index: 2, kind: input, shape index: {}]   ;;  %s1399_s3 = inlined_call_operand.vmem [shape: f32[3,1,128], index: 3, kind: input, shape index: {}]   ;;  %s1400_s4 = inlined_call_operand.vmem [shape: f32[48,8], index: 4, kind: input, shape index: {}]   ;;  %s1401_s5 = inlined_call_operand.vmem [shape: f32[128,128], index: 5, kind: input, shape index: {}]   ;;  %s1402_s6 = inlined_call_operand.vmem [shape: f32[1,128], index: 6, kind: input, shape index: {}]   ;;  %s1403_s7 = inlined_call_operand.vmem [shape: f32[8,128], index: 7, kind: output, shape index: {0}]   ;;  %s1404_s8 = inlined_call_operand.vmem [shape: f32[8,128], index: 8, kind: output, shape index: {1}]  }
   0x1   :  { %s1208_s29 = smov 0   ;;  %s1210_s30 = smov 0  }
   0x2   :  { %s1212_s9 = smov 0  }
   0x3 LB: > { %s28_s10 = sadd.s32 1, %s1140_s29  ;;  %s31_s11 = sadd.s32 1, %s1144_s30  ;;  %s1148_s9 = sphi %s1212_s9, %s19_s9   ;;  %s1144_s30 = sphi %s1210_s30, %s1411_s30   ;;  %s1140_s29 = sphi %s1208_s29, %s1410_s29   ;;  %s1136_s28 = sphi %s1206_s28, %s1409_s28   ;;  %s1132_s27 = sphi %s1204_s27, %s1408_s27  }
   0x4   : > { %p29_p0 = scmp.ge.s32.totalorder %s28_s10, 3  ;;  %p882_p1 = scmp.ge.s32.totalorder %s1148_s9, 1 }
   0x5   : > { %p286_p2 = scmp.lt.s32.totalorder %s1148_s9, 10 }
   0x6   : > { %s1413_s10 = smov (%p29_p0, %s28_s10), 0  ;;  %s1415_s11 = smov (!%p29_p0, %s31_s11), %s1144_s30 }
   0x7   : > { %p287_p3 = pnand %p882_p1, %p286_p2  ;;  %p33_p4 = scmp.ge.s32.totalorder %s1415_s11, 3 }
   0x8   : > { %p323_p5 = scmp.lt.s32.totalorder (!%p287_p3), %s1136_s28, 2  ;;  %s885_s12 = sshll.u32 (!%p287_p3), %s1132_s27, 1 }
   0x9   : > { %s1417_s11 = smov (%p33_p4, %s1415_s11), 0  ;;  %290 = sbr.rel (%p287_p3) target bundleno = 1085 (0x43d), region = 48 }
   0xa   : > { %p332_p6 = scmp.lt.s32.totalorder (!%p287_p3), %s885_s12, 5  ;;  %p338_p7 = scmp.eq.s32.totalorder (!%p287_p3), %s1136_s28, 0 }
   0xb   : > { %p339_p8 = scmp.eq.s32.totalorder (!%p287_p3), %s1132_s27, 0 }
   0xd   : > { %p340_p9 = pnand (!%p287_p3), %p339_p8, %p338_p7 }
  0x10   : > { %s1242_s13 = scalar_select %p323_p5, %s1136_s28, 2 }
  0x11   : > { %s1419_s12 = smov (!%p332_p6, %s885_s12), 5  ;;  %343 = sbr.rel (%p340_p9) target bundleno = 24 (0x18), region = 52 }
  0x12   : > { %s916_s14 = sshll.u32 %s1242_s13, 6  ;;  %s330_s17 = scalar_lea.vmem %s1399_s3, %s1242_s13  ;;  %v1098_v0 = vld [vmem:[%s1396_s0] sm:$0xff] (!%p340_p9)   ;;  %v1099_v1 = vld [vmem:[%s1396_s0 + $0x8] sm:$0xff] (!%p340_p9)   ;;  %v1100_v2 = vld [vmem:[%s1396_s0 + $0x10] sm:$0xff] (!%p340_p9)  }
  0x13   : > { %s1252_s20 = scalar_lea.vmem %s1398_s2, %s916_s14  ;;  %s886_s21 = sshll.u32 %s1419_s12, 3  ;;  %368 = vst [vmem:[#allocation2 + $0x18] sm:$0xff] (!%p340_p9), %v1098_v0  ;;  %369 = vst [vmem:[#allocation2 + $0x20] sm:$0xff] (!%p340_p9), %v1099_v1 }
  0x14   : > { %s1257_s24 = scalar_lea.vmem %s1400_s4, %s886_s21  ;;  %370 = vst [vmem:[#allocation2 + $0x28] sm:$0xff] (!%p340_p9), %v1100_v2 }
  0x18 PF: > { %s378_s18 = sadd.s32 1, %s1136_s28  ;;  %s1405_s19 = sshll.u32 %s1132_s27, 4  ;;  %v1102_v3 = vld [vmem:[%s1252_s20] sm:$0xff]   ;;  %v1150_v4 = vmov 0.0   ;;  %vm1151_vm0 = vmmov 0   ;;  %v1103_v5 = vld [vmem:[%s1252_s20 + $0x8] sm:$0xff]  }
  0x19   : > { %950 = vmatprep.subr.bf16.mxu0 %v1150_v4  ;;  %p379_p10 = scmp.lt.s32.totalorder %s378_s18, 0  ;;  %s380_s21 = ssub.s32 0, %s378_s18  ;;  %956 = vmatprep.mubr.msk.bf16.mxu0 %vm1151_vm0, %v1150_v4  ;;  %v1104_v6 = vld [vmem:[%s1252_s20 + $0x10] sm:$0xff]   ;;  %v1105_v7 = vld [vmem:[%s1252_s20 + $0x18] sm:$0xff]   ;;  %v1106_v8 = vld [vmem:[%s1252_s20 + $0x20] sm:$0xff]   ;;  %vm425_vm1 = vcmask 392192  }
  0x1a   : > { %s892_s22 = smin.u32 %s380_s21, %s378_s18  ;;  %s372_s23 = sshra.s32 %s1405_s19, 3  ;;  %960 = vmatprep.subr.bf16.mxu1 %v1150_v4  ;;  %976 = vmatprep.mubr.msk.bf16.mxu1 %vm1151_vm0, %v1150_v4  ;;  %v1107_v11 = vld [vmem:[%s1252_s20 + $0x28] sm:$0xff]   ;;  %v1108_v14 = vld [vmem:[%s1252_s20 + $0x30] sm:$0xff]   ;;  %v1109_v15 = vld [vmem:[%s1252_s20 + $0x38] sm:$0xff]  }
  0x1b   : > { %s382_s25 = sand.u32 1, %s892_s22   ;;  %s891_s26 = sshll.u32 %s372_s23, 2  ;;  %961 = vmatpush3.bf16.msra.mxu1 %v1102_v3  ;;  %v899_v16 = vld [vmem:[%s330_s17] ss:$0 sm:$0xff] }
  0x1c   : > { %s383_s15 = ssub.s32 0, %s382_s25  ;;  %s375_s12 = scalar_lea.vmem %s1397_s1, %s891_s26  ;;  %962 = vmatprep.subr.bf16.mxu1 %v1150_v4 }
  0x1d   : > { %s1421_s15 = smov (!%p379_p10, %s383_s15), %s382_s25  ;;  %v1101_v13 = vld [vmem:[%s375_s12] sm:$0xff]   ;;  %p470_p12 = scmp.gt.s32.totalorder %s1136_s28, 0 }
  0x1e   : > { %p894_p11 = scmp.lt.s32.totalorder %s1421_s15, 0  ;;  %s389_s21 = sadd.s32 2, %s1421_s15 }
  0x1f   : > { %963 = vmatpush3.bf16.msra.mxu1 %v1103_v5  ;;  %s471_s25 = scalar_select %p470_p12, 0.0, -inf }
  0x20   : > { %964 = vmatprep.subr.bf16.mxu1 %v1150_v4  ;;  %s1423_s21 = smov (!%p894_p11, %s389_s21), %s1421_s15  ;;  %p587_p13 = scmp.eq.s32.totalorder %s1136_s28, 2 }
  0x21   : > { %s391_s19 = smul.u32 48, %s1423_s21  ;;  %v472_v20 = vstv %s471_s25  ;;  %s393_s17 = ssub.s32 0, %s1136_s28 }
  0x22   : > { %p1298_p0 = pnand %p587_p13, %p339_p8  ;;  %s895_s20 = smin.u32 %s1136_s28, %s393_s17 }
  0x23   : > { %965 = vmatpush3.bf16.msra.mxu1 %v1104_v6  ;;  %s406_s22 = sshra.s32 %s391_s19, 4  ;;  %s395_s15 = sand.u32 1, %s895_s20   ;;  %v1152_v32 = vmov (!%p1298_p0), 0.0  }
  0x24   : > { %966 = vmatprep.subr.bf16.mxu1 %v1150_v4  ;;  %s898_s23 = sshll.u32 %s406_s22, 3  ;;  %p392_p1 = scmp.lt.s32.totalorder %s1136_s28, 0  ;;  %592 = vst [vmem:[%s1404_s8] sm:$0xff] (!%p1298_p0), %v1152_v32 }
  0x25   : > { %s409_s26 = scalar_lea.vmem [#allocation2], %s898_s23  ;;  %s396_s16 = ssub.s32 0, %s395_s15 }
  0x26   : > { %v410_v9 = vld [vmem:[%s409_s26] sm:$0xff]  ;;  %v411_v10 = vld [vmem:[%s409_s26 + $0x8] sm:$0xff]  ;;  %v412_v12 = vld [vmem:[%s409_s26 + $0x10] sm:$0xff]  ;;  %s1425_s16 = smov (!%p392_p1, %s396_s16), %s395_s15  ;;  %s1407_s21 = sshll.u32 %s1132_s27, 4 }
  0x27   : > { %967 = vmatpush3.bf16.msra.mxu1 %v1105_v7  ;;  %951 = vmatpush3.bf16.msra.mxu0 %v410_v9  ;;  %p897_p2 = scmp.lt.s32.totalorder %s1425_s16, 0  ;;  %s402_s14 = sadd.s32 2, %s1425_s16 }
  0x28   : > { %968 = vmatprep.subr.bf16.mxu1 %v1150_v4  ;;  %952 = vmatprep.subr.bf16.mxu0 %v1150_v4 }
  0x29   : > { %s1427_s14 = smov (!%p897_p2, %s402_s14), %s1425_s16 }
  0x2a   : > { %s404_s12 = smul.u32 48, %s1427_s14 }
  0x2b   : > { %969 = vmatpush3.bf16.msra.mxu1 %v1106_v8  ;;  %953 = vmatpush3.bf16.msra.mxu0 %v411_v10 }
  0x2c   : > { %970 = vmatprep.subr.bf16.mxu1 %v1150_v4  ;;  %954 = vmatprep.subr.bf16.mxu0 %v1150_v4  ;;  %s405_s22 = sadd.s32 %s1407_s21, %s404_s12 }
  0x2d   : > { %s582_s23 = sshra.s32 %s405_s22, 4 }
  0x2e   : > { %s910_s26 = sshll.u32 %s582_s23, 3 }
  0x2f   : > { %971 = vmatpush3.bf16.msra.mxu1 %v1107_v11  ;;  %955 = vmatpush3.bf16.msra.mxu0 %v412_v12  ;;  %s585_s18 = scalar_lea.vmem [#allocation2], %s910_s26 }
  0x30   : > { %972 = vmatprep.subr.bf16.mxu1 %v1150_v4 }
  0x32   : > { %957 = vmatmul.mubr.msk.bf16.vlgmr.msra.gmra.mrb[0].mxu0 %vm425_vm1, %v1101_v13 }
  0x33   : > { %973 = vmatpush3.bf16.msra.mxu1 %v1108_v14 }
  0x34   : > { %974 = vmatprep.subr.bf16.mxu1 %v1150_v4 }
  0x37   : > { %975 = vmatpush3.bf16.msra.mxu1 %v1109_v15 }
 0x105   : > { %v463_v17 = vpop.f32.mrb[0].mxu0 }
 0x106   : > { %v464_v18 = vadd.f32 %v899_v16, %v463_v17  ;;  %v958_v19 = vpop.f32.mrb[1].mxu0 }
 0x107   : > { %v466_v21 = vpop.f32.mrb[2].mxu0 }
 0x108   : > { %v467_v22 = vadd.f32 %v899_v16, %v466_v21  ;;  %v959_v23 = vpop.f32.mrb[3].mxu0  ;;  %v473_v24 = vmax.f32 %v464_v18, %v472_v20 }
 0x10a   : > { %v474_v25 = vmax.f32 %v467_v22, %v472_v20 }
 0x10c   : > { %v475_v26 = vpack.c.bf16 %v474_v25, %v473_v24 }
 0x10e   : > { %977 = vmatmul.mubr.bf16.vlgmr.msra.gmra.mrb[0].mxu1 %v475_v26 }
 0x1e0   : > { %591 = sbr.rel (%p1298_p0) target bundleno = 487 (0x1e7), region = 56 }
 0x1e1   : > { %v574_v27 = vpop.f32.mrb[0].mxu1 }
 0x1e2   : > { %v978_v28 = vpop.f32.mrb[1].mxu1 }
 0x1e3   : > { %v577_v29 = vpop.f32.mrb[2].mxu1 }
 0x1e4   : > { %v581_v30 = vpack.c.bf16 %v577_v29, %v574_v27  ;;  %v979_v31 = vpop.f32.mrb[3].mxu1 }
 0x1e6   : > { %586 = vst [vmem:[%s585_s18] sm:$0xff] %v581_v30 }
 0x1e7 PF: > { %p911_p3 = scmp.ne.s32.totalorder %s1136_s28, 2 }
 0x1e8   : > { %v597_v33 = vld [vmem:[%s1257_s24] sm:$0xff] (!%p911_p3)  ;;  %v1153_v34 = vmov (!%p911_p3), 0.0|0.0   ;;  %v598_v35 = vld [vmem:[%s1257_s24 + $0x8] sm:$0xff] (!%p911_p3)  ;;  %vm1154_vm2 = vmmov (!%p911_p3), 0   ;;  %v1155_v36 = vmov (!%p911_p3), 0.0   ;;  %vm631_vm3 = vcmask (!%p911_p3), 130048  }
 0x1e9   : > { %595 = sbr.rel (%p911_p3) target bundleno = 833 (0x341), region = 60  ;;  %599 = vxpose.xlu0.b32.start [1/2] (short) (narrow) (!%p911_p3), %v597_v33, 8  ;;  %1022 = vmatprep.subr.bf16.mxu0 (!%p911_p3), %v1153_v34  ;;  %v596_v38 = vld [vmem:[%s1404_s8] sm:$0xff] (!%p911_p3) }
 0x1ea   : > { %1024 = vmatpush3.bf16.msra.mxu0 (!%p911_p3), %v475_v26  ;;  %984 = vmatprep.mubr.msk.f32.mxu0 (!%p911_p3), %vm1154_vm2, %v1155_v36 }
 0x1ed   : > { %600 = vxpose.xlu0.b32.end [2/2] (short) (narrow) (!%p911_p3), %v598_v35, 8 }
 0x269   : > { %v615_v37 = vpop.trf.xlu0 }
 0x26a   : > { %985 = vmatmul.mubr.msk.f32.vlgmr.msra.gmra.mrb[0].mxu0 %vm631_vm3, %v615_v37 }
 0x33d   : > { %v701_v39 = vpop.f32.mrb[0].mxu0 }
 0x33e   : > { %v705_v40 = vadd.f32 %v701_v39, %v596_v38  ;;  %v986_v41 = vpop.f32.mrb[1].mxu0 }
 0x340   : > { %706 = vst [vmem:[%s1404_s8] sm:$0xff] %v705_v40 }
 0x341 PF: > { %p707_p4 = scmp.eq.s32.totalorder %s1132_s27, 2 }
 0x343   : > { %p708_p5 = pnand %p707_p4, %p587_p13 }
 0x344   : > { %v713_v42 = vld [vmem:[%s1401_s5] sm:$0xff] (!%p708_p5)  ;;  %v714_v43 = vld [vmem:[%s1401_s5 + $0x8] sm:$0xff] (!%p708_p5)  ;;  %v715_v44 = vld [vmem:[%s1401_s5 + $0x10] sm:$0xff] (!%p708_p5)  ;;  %v1156_v45 = vmov (!%p708_p5), 0.0|0.0   ;;  %vm1157_vm4 = vmmov (!%p708_p5), 0   ;;  %v1158_v48 = vmov (!%p708_p5), 0.0  }
 0x345   : > { %711 = sbr.rel (%p708_p5) target bundleno = 1085 (0x43d), region = 64  ;;  %1025 = vmatprep.subr.bf16.mxu0 (!%p708_p5), %v1156_v45  ;;  %v1026_v46 = vpack.c.bf16 (!%p708_p5), %v714_v43, %v713_v42  ;;  %v716_v47 = vld [vmem:[%s1401_s5 + $0x18] sm:$0xff] (!%p708_p5)  ;;  %1019 = vmatprep.mubr.msk.f32.mxu0 (!%p708_p5), %vm1157_vm4, %v1158_v48  ;;  %v717_v50 = vld [vmem:[%s1401_s5 + $0x20] sm:$0xff] (!%p708_p5)  ;;  %v718_v51 = vld [vmem:[%s1401_s5 + $0x28] sm:$0xff] (!%p708_p5) }
 0x346   : > { %v1029_v49 = vpack.c.bf16 (!%p708_p5), %v716_v47, %v715_v44  ;;  %v1032_v52 = vpack.c.bf16 (!%p708_p5), %v718_v51, %v717_v50  ;;  %v719_v53 = vld [vmem:[%s1401_s5 + $0x30] sm:$0xff] (!%p708_p5)  ;;  %v720_v54 = vld [vmem:[%s1401_s5 + $0x38] sm:$0xff] (!%p708_p5)  ;;  %v721_v56 = vld [vmem:[%s1401_s5 + $0x40] sm:$0xff] (!%p708_p5) }
 0x347   : > { %1027 = vmatpush3.bf16.msra.mxu0 (!%p708_p5), %v1026_v46  ;;  %v1035_v55 = vpack.c.bf16 (!%p708_p5), %v720_v54, %v719_v53  ;;  %v722_v57 = vld [vmem:[%s1401_s5 + $0x48] sm:$0xff] (!%p708_p5)  ;;  %v723_v59 = vld [vmem:[%s1401_s5 + $0x50] sm:$0xff] (!%p708_p5)  ;;  %v724_v60 = vld [vmem:[%s1401_s5 + $0x58] sm:$0xff] (!%p708_p5) }
 0x348   : > { %1028 = vmatprep.subr.bf16.mxu0 (!%p708_p5), %v1156_v45  ;;  %v1038_v58 = vpack.c.bf16 (!%p708_p5), %v722_v57, %v721_v56  ;;  %v1041_v61 = vpack.c.bf16 (!%p708_p5), %v724_v60, %v723_v59  ;;  %v725_v62 = vld [vmem:[%s1401_s5 + $0x60] sm:$0xff] (!%p708_p5)  ;;  %v726_v63 = vld [vmem:[%s1401_s5 + $0x68] sm:$0xff] (!%p708_p5)  ;;  %v727_v1 = vld [vmem:[%s1401_s5 + $0x70] sm:$0xff] (!%p708_p5) }
 0x349   : > { %v1044_v0 = vpack.c.bf16 (!%p708_p5), %v726_v63, %v725_v62  ;;  %v728_v2 = vld [vmem:[%s1401_s5 + $0x78] sm:$0xff] (!%p708_p5)  ;;  %v712_v4 = vld [vmem:[%s1404_s8] sm:$0xff] (!%p708_p5) }
 0x34a   : > { %v1047_v3 = vpack.c.bf16 (!%p708_p5), %v728_v2, %v727_v1  ;;  %v913_v5 = vld [vmem:[%s1402_s6] ss:$0 sm:$0xff] (!%p708_p5) }
 0x34b   : > { %1030 = vmatpush3.bf16.msra.mxu0 (!%p708_p5), %v1029_v49 }
 0x34c   : > { %1031 = vmatprep.subr.bf16.mxu0 %v1156_v45 }
 0x34f   : > { %1033 = vmatpush3.bf16.msra.mxu0 %v1032_v52 }
 0x350   : > { %1034 = vmatprep.subr.bf16.mxu0 %v1156_v45 }
 0x353   : > { %1036 = vmatpush3.bf16.msra.mxu0 %v1035_v55 }
 0x354   : > { %1037 = vmatprep.subr.bf16.mxu0 %v1156_v45 }
 0x357   : > { %1039 = vmatpush3.bf16.msra.mxu0 %v1038_v58 }
 0x358   : > { %1040 = vmatprep.subr.bf16.mxu0 %v1156_v45 }
 0x35b   : > { %1042 = vmatpush3.bf16.msra.mxu0 %v1041_v61 }
 0x35c   : > { %1043 = vmatprep.subr.bf16.mxu0 %v1156_v45 }
 0x35f   : > { %1045 = vmatpush3.bf16.msra.mxu0 %v1044_v0 }
 0x360   : > { %1046 = vmatprep.subr.bf16.mxu0 %v1156_v45 }
 0x363   : > { %1048 = vmatpush3.bf16.msra.mxu0 %v1047_v3 }
 0x366   : > { %1020 = vmatmul.mubr.f32.vlgmr.msra.gmra.mrb[0].mxu0 %v712_v4 }
 0x439   : > { %v802_v6 = vpop.f32.mrb[0].mxu0 }
 0x43a   : > { %v803_v7 = vadd.f32 %v913_v5, %v802_v6  ;;  %v1021_v8 = vpop.f32.mrb[1].mxu0 }
 0x43c   : > { %806 = vst [vmem:[%s1403_s7] sm:$0xff] %v803_v7 }
 0x43d PF: > { %s19_s9 = sadd.s32 1, %s1148_s9   ;;  %s1408_s27 = smov %s1140_s29 }
 0x43e   : > { %p16_p6 = scmp.ge.s32.totalorder %s19_s9, 11   ;;  %s1409_s28 = smov %s1144_s30 }
 0x43f   : > { %s1410_s29 = smov %s1413_s10  ;;  %s1411_s30 = smov %s1417_s11 }
 0x440   :  { %18 = sbr.rel (!%p16_p6) target bundleno = 3 (0x3), region = 107 }

</bundles_post_ra>
